<compile_context>
chip_gen: v5e
topology: v5e:2x2
jax: 0.10.0
libtpu: 0.0.40
codegen_flags: <defaults>
</compile_context>

<pallas_src>
import jax
import jax.numpy as jnp
from jax.experimental import pallas as pl
from jax.experimental.pallas import tpu as pltpu


# ----------------------------------------------------------------------------
# Recommended path: FCView is metadata-only on contiguous data.
# ----------------------------------------------------------------------------
def fc_view(x):
    return jnp.reshape(x, (x.shape[0], -1))


# ----------------------------------------------------------------------------
# Tiled-copy Pallas path.
# ----------------------------------------------------------------------------
def _copy_kernel(x_ref, o_ref):
    # Pure relayout: copy one tile through VMEM.
    o_ref[...] = x_ref[...]


def _chip_budget():
    """(per-block byte target, vmem_limit_bytes or None) per TPU generation.

    Budget rule of thumb: in + out, each double-buffered => ~4 live blocks.
      v7x : 64 MiB physical / 32 MiB scoped default -> 8 MiB blocks need the flag.
      v6e : 32 MiB scoped default -> 4 x 4 MiB fits with headroom.
      v5e / unknown : 16 MiB scoped default -> stay at 2 MiB.
    """
    kind = ""
    try:
        kind = jax.devices()[0].device_kind.lower()
    except Exception:
        pass
    if ("v7" in kind) or ("7x" in kind):
        return 8 * 1024 * 1024, 48 * 1024 * 1024
    if "v6" in kind:
        return 4 * 1024 * 1024, None
    return 2 * 1024 * 1024, None


def _pick_layout(nB, flat, itemsize, target_bytes):
    """Return (shape2d, block_shape, grid) for a lane/sublane-dense copy.

    Primary: retile the flattened element stream as (rows, L), L the largest
    multiple-of-128 divisor of total in {2048..128}. Every block is (tm, L)
    with tm a multiple of the sublane quantum (or the full row count), so all
    stores are unmasked lane-dense vst and no degenerate fallback exists.

    Fallback (total has no multiple-of-128 factor): tile the logical
    (nB, flat) shape; edges use full-dim blocks (legal) or masked stores —
    correct, merely slower, and only reachable for odd element counts.
    """
    total = nB * flat
    sub = max(8, 32 // max(1, itemsize))          # 8 f32 / 16 bf16 / 32 int8

    for L in (2048, 1024, 512, 256, 128):
        if total % L == 0:
            rows = total // L
            tm = max(1, target_bytes // (L * itemsize))
            if tm >= rows:
                tm = rows                          # whole array in one block
            else:
                tm = max(sub, (tm // sub) * sub)   # sublane-aligned row tile
                tm = min(tm, rows)
            return (rows, L), (tm, L), (pl.cdiv(rows, tm),)

    # Ragged fallback: element count has an odd factor everywhere.
    cap_lanes = max(128, (target_bytes // (sub * itemsize)) // 128 * 128)
    tn = flat if flat <= cap_lanes else cap_lanes  # full dim or x128 (edge masked)
    tm = max(1, target_bytes // (tn * itemsize))
    if tm >= nB:
        tm = nB
    else:
        tm = max(sub, (tm // sub) * sub)
        tm = min(tm, nB)
    return (nB, flat), (tm, tn), (pl.cdiv(nB, tm), pl.cdiv(flat, tn))


def fc_view_pallas(x):
    """FCView.forward as an explicit, tiled Pallas copy: (N, ...) -> (N, prod(...))."""
    nB = x.shape[0]
    flat = 1
    for d in x.shape[1:]:
        flat *= d
    total = nB * flat
    itemsize = jnp.dtype(x.dtype).itemsize

    target_bytes, vmem_limit = _chip_budget()
    shape2d, block, grid = _pick_layout(nB, flat, itemsize, target_bytes)

    x2d = jnp.reshape(x, shape2d)                  # metadata-only glue

    if len(grid) == 1:
        index_map = lambda i: (i, 0)
    else:
        index_map = lambda i, j: (i, j)

    y2d = pl.pallas_call(
        _copy_kernel,
        out_shape=jax.ShapeDtypeStruct(shape2d, x.dtype),
        grid=grid,
        in_specs=[pl.BlockSpec(block, index_map)],
        out_specs=pl.BlockSpec(block, index_map),
        # No input_output_aliases: the caller does not donate x, so an alias
        # would only force XLA to insert a defensive full copy of the input.
        compiler_params=pltpu.CompilerParams(
            dimension_semantics=("parallel",) * len(grid),
            vmem_limit_bytes=vmem_limit,
        ),
        cost_estimate=pl.CostEstimate(
            flops=0, transcendentals=0, bytes_accessed=2 * total * itemsize),
    )(x2d)

    return jnp.reshape(y2d, (nB, flat))            # metadata-only back to (nB, flat)


# ----------------------------------------------------------------------------
# Direct HBM->HBM DMA path: the performance floor when the copy must exist.
# ----------------------------------------------------------------------------
def _dma_copy_kernel(x_hbm_ref, o_hbm_ref, sem):
    cp = pltpu.make_async_copy(x_hbm_ref, o_hbm_ref, sem)
    cp.start()
    cp.wait()


def fc_view_pallas_dma(x):
    """FCView.forward as one HBM->HBM DMA (no VMEM staging, no grid overhead)."""
    nB = x.shape[0]
    flat = 1
    for d in x.shape[1:]:
        flat *= d
    x2d = jnp.reshape(x, (nB, flat))               # metadata-only glue

    return pl.pallas_call(
        _dma_copy_kernel,
        out_shape=jax.ShapeDtypeStruct((nB, flat), x.dtype),
        in_specs=[pl.BlockSpec(memory_space=pl.ANY)],
        out_specs=pl.BlockSpec(memory_space=pl.ANY),
        scratch_shapes=[pltpu.SemaphoreType.DMA],
        cost_estimate=pl.CostEstimate(
            flops=0, transcendentals=0,
            bytes_accessed=2 * nB * flat * jnp.dtype(x.dtype).itemsize),
    )(x2d)


if __name__ == "__main__":
    key = jax.random.PRNGKey(0)
    # Small NCHW input consistent with a conv feature map feeding an FC layer.
    x = jax.random.normal(key, (2, 4, 16, 16), dtype=jnp.float32)

    # Reference semantics: torch .view == reshape on contiguous row-major data.
    y_ref = jnp.reshape(x, (x.shape[0], -1))

    y_fast = fc_view(x)                 # zero-cost metadata path
    y_tiled = fc_view_pallas(x)         # tiled Pallas copy path
    y_dma = fc_view_pallas_dma(x)       # single HBM->HBM DMA path
    jax.block_until_ready((y_fast, y_tiled, y_dma))

    assert y_tiled.shape == (2, 4 * 16 * 16), y_tiled.shape
    assert y_tiled.dtype == x.dtype
    assert bool(jnp.all(y_tiled == y_ref))
    assert bool(jnp.all(y_dma == y_ref))
    assert bool(jnp.all(y_fast == y_ref))

    print("KERNEL_OK")
</pallas_src>

<mosaic_0001>
module attributes {stable_mosaic.version = 11 : i64} {
  func.func @_copy_kernel(%arg0: i32, %arg1: memref<1x2048xf32, #tpu.memory_space<vmem>>, %arg2: memref<1x2048xf32, #tpu.memory_space<vmem>>) attributes {dimension_semantics = [#tpu.dimension_semantics<parallel>], iteration_bounds = array<i64: 1>, scalar_prefetch = 0 : i64, scratch_operands = 0 : i64, tpu.core_type = #tpu.core_type<tc>, window_params = [{transform_indices = @transform_0, window_bounds = array<i64: 1, 2048>}, {transform_indices = @transform_1, window_bounds = array<i64: 1, 2048>}]} {
    %c0 = arith.constant 0 : index
    %c0_0 = arith.constant 0 : index
    %0 = vector.load %arg1[%c0, %c0_0] : memref<1x2048xf32, #tpu.memory_space<vmem>>, vector<1x2048xf32>
    %c0_1 = arith.constant 0 : index
    %c0_2 = arith.constant 0 : index
    %1 = vector.load %arg2[%c0_1, %c0_2] : memref<1x2048xf32, #tpu.memory_space<vmem>>, vector<1x2048xf32>
    tpu.vector_store %arg2[%c0_1, %c0_2], %0 {strides = array<i32>} : memref<1x2048xf32, #tpu.memory_space<vmem>>, vector<1x2048xf32>,
    return
  }
  func.func @transform_0(%arg0: i32) -> (i32, i32) {
    %c0_i32 = arith.constant 0 : i32
    %c0_i32_0 = arith.constant 0 : i32
    return %arg0, %c0_i32 : i32, i32
  }
  func.func @transform_1(%arg0: i32) -> (i32, i32) {
    %c0_i32 = arith.constant 0 : i32
    %c0_i32_0 = arith.constant 0 : i32
    return %arg0, %c0_i32 : i32, i32
  }
}

</mosaic_0001>

<bundles_post_ra>
// kernel: tpu_custom_call.1
= control target key start
LH: loop header
LB: loop body
LE: loop exit
PB: predicated region body
PF: predicated region fallthrough
CT: control target
= control target key end

     0   :  { %6 = vsyncpa [#allocation3], 0  ;;  %s116_s0 = inlined_call_operand.hbm [shape: f32[1,2048], index: 0, kind: input, shape index: {}]   ;;  %s117_s1 = inlined_call_operand.hbm [shape: f32[1,2048], index: 1, kind: output, shape index: {}]  }
   0x1   :  { %7 = vsyncpa [#allocation4], 0  ;;  %s13_s8 = sshll.u32 %s116_s0, 4  ;;  %s98_s9 = smov [#allocation2]   ;;  %s14_s8 = int_to_ptr.hbm [resolvable:$true] %s13_s8 }
   0x2   :  { %s15_s10 = sshll.u32 %s98_s9, 4  ;;  %s16_s10 = int_to_ptr.vmem [resolvable:$true] %s15_s10 }
   0x3   :  { %18 = dma.hbm_to_vmem [thread:$0]  %s14_s8, 256, %s16_s10, [#allocation3]  }
   0x4   :  { %94 = dma.done.wait [#allocation3], 256  }
   0x5   :  { %95 = vsyncadd [#allocation3], 4294967040  ;;  %s99_s11 = smov [#allocation5]   ;;  %s34_s15 = sshll.u32 %s117_s1, 4  ;;  %v23_v0 = vld [vmem:[#allocation2] sm:$0xff]  ;;  %v24_v1 = vld [vmem:[#allocation2 + $0x8] sm:$0xff]  ;;  %s35_s15 = int_to_ptr.hbm [resolvable:$true] %s34_s15 }
   0x6   :  { %s32_s12 = sshll.u32 %s99_s11, 4  ;;  %25 = vst [vmem:[#allocation5] sm:$0xff] %v23_v0  ;;  %s33_s12 = int_to_ptr.vmem [resolvable:$true] %s32_s12 }
   0x7   :  { %26 = vst [vmem:[#allocation5 + $0x8] sm:$0xff] %v24_v1 }
   0x8   :  { %37 = dma.vmem_to_hbm [thread:$0]  %s33_s12, 256, %s35_s15, [#allocation4]  }
   0x9   :  { %96 = dma.done.wait [#allocation4], 256  }
   0xa   :  { %97 = vsyncadd [#allocation4], 4294967040 }
   0xb   :  { %42 = vsyncpa [#allocation3], 1 }
   0xc   :  { %43 = vsyncpa [#allocation4], 1 }

</bundles_post_ra>
